<compile_context>
chip_gen: v5e
topology: v5e:2x2
jax: 0.10.0
libtpu: 0.0.40
codegen_flags: <defaults>
</compile_context>

<pallas_src>
import functools

import jax
import jax.numpy as jnp
from jax import lax
from jax.experimental import pallas as pl
from jax.experimental.pallas import tpu as pltpu

IN_DIM = 228
H1_DIM = 256
H2_DIM = 128
OUT_DIM = 30


def _round_up(n, m):
    return ((n + m - 1) // m) * m


def _choose_tm(batch, tm_max):
    """Batch tile: multiple of 8 (sublane), capped so the grid has >=2 steps
    when the batch allows (v7x megacore), and capped at tm_max."""
    if batch <= 8:
        # Block dim == full array dim is always legal, even if not %8.
        return batch
    return max(8, min(tm_max, _round_up(pl.cdiv(batch, 2), 8)))


def _embedding_l2_kernel(x_ref, w1_ref, b1_ref, w2_ref, b2_ref, w3_ref, b3_ref,
                         o_ref):
    # Cast input to the weights' compute dtype inside the kernel (no wrapper
    # pre-pass); matmuls accumulate in f32 on the MXU.
    x = x_ref[...].astype(w1_ref.dtype)
    # fc1 + ReLU (bias add / activation in f32)
    h1 = jnp.dot(x, w1_ref[...], preferred_element_type=jnp.float32)
    h1 = jnp.maximum(h1 + b1_ref[...], 0.0)
    # fc2 + ReLU
    h2 = jnp.dot(h1.astype(w2_ref.dtype), w2_ref[...],
                 preferred_element_type=jnp.float32)
    h2 = jnp.maximum(h2 + b2_ref[...], 0.0)
    # fc3 (no activation)
    h3 = jnp.dot(h2.astype(w3_ref.dtype), w3_ref[...],
                 preferred_element_type=jnp.float32)
    h3 = h3 + b3_ref[...]
    # L2 normalize along the feature axis (EUP rsqrt instead of sqrt+divide).
    inv_norm = lax.rsqrt(jnp.sum(h3 * h3, axis=1, keepdims=True))
    o_ref[...] = (h3 * inv_norm).astype(o_ref.dtype)


def embedding_net_l2(x, params, *, compute_dtype=jnp.bfloat16, tm=1024):
    """x: (B, 228) float-like.  params: dict of transposed weights / biases."""
    B, K = x.shape
    assert K == IN_DIM, f"expected {IN_DIM} input features, got {K}"

    tm_eff = _choose_tm(B, tm)
    grid = (pl.cdiv(B, tm_eff),)

    # Weight/bias casts are tiny one-off ops (weights are ~0.25 MB total).
    w1 = params["w1"].astype(compute_dtype)          # (228, 256)
    b1 = params["b1"].astype(jnp.float32)            # (1, 256)
    w2 = params["w2"].astype(compute_dtype)          # (256, 128)
    b2 = params["b2"].astype(jnp.float32)            # (1, 128)
    w3 = params["w3"].astype(compute_dtype)          # (128, 30)
    b3 = params["b3"].astype(jnp.float32)            # (1, 30)

    flops = 2 * B * (IN_DIM * H1_DIM + H1_DIM * H2_DIM + H2_DIM * OUT_DIM)
    weight_bytes = sum(int(a.size) * a.dtype.itemsize
                       for a in (w1, b1, w2, b2, w3, b3))
    bytes_accessed = (B * IN_DIM * x.dtype.itemsize        # x read
                      + B * OUT_DIM * 4                     # out write (f32)
                      + weight_bytes)

    out = pl.pallas_call(
        _embedding_l2_kernel,
        out_shape=jax.ShapeDtypeStruct((B, OUT_DIM), jnp.float32),
        grid=grid,
        in_specs=[
            # x streamed in (tm, 228) tiles; 228 == full array dim is legal.
            pl.BlockSpec((tm_eff, IN_DIM), lambda i: (i, 0)),
            # Weights / biases: constant index maps -> VMEM-resident.
            pl.BlockSpec(w1.shape, lambda i: (0, 0)),
            pl.BlockSpec(b1.shape, lambda i: (0, 0)),
            pl.BlockSpec(w2.shape, lambda i: (0, 0)),
            pl.BlockSpec(b2.shape, lambda i: (0, 0)),
            pl.BlockSpec(w3.shape, lambda i: (0, 0)),
            pl.BlockSpec(b3.shape, lambda i: (0, 0)),
        ],
        out_specs=pl.BlockSpec((tm_eff, OUT_DIM), lambda i: (i, 0)),
        compiler_params=pltpu.CompilerParams(
            dimension_semantics=("parallel",),
            vmem_limit_bytes=32 * 1024 * 1024),
        cost_estimate=pl.CostEstimate(
            flops=flops, transcendentals=B, bytes_accessed=bytes_accessed),
    )(x, w1, b1, w2, b2, w3, b3)

    return out


def init_params(key):
    """Deterministic init mimicking nn.Linear's uniform(-1/sqrt(fan_in), ...).
    Weights are stored transposed: (in_features, out_features)."""
    dims = [(IN_DIM, H1_DIM), (H1_DIM, H2_DIM), (H2_DIM, OUT_DIM)]
    params = {}
    for idx, (fan_in, fan_out) in enumerate(dims, start=1):
        key, kw, kb = jax.random.split(key, 3)
        bound = 1.0 / jnp.sqrt(jnp.float32(fan_in))
        params[f"w{idx}"] = jax.random.uniform(
            kw, (fan_in, fan_out), jnp.float32, -bound, bound)
        # keep bias 2D (1, out) so it lives cleanly in VMEM lanes
        params[f"b{idx}"] = jax.random.uniform(
            kb, (1, fan_out), jnp.float32, -bound, bound)
    return params


def reference_forward(x, params):
    h = jnp.maximum(x @ params["w1"] + params["b1"], 0.0)
    h = jnp.maximum(h @ params["w2"] + params["b2"], 0.0)
    h = h @ params["w3"] + params["b3"]
    return h / jnp.sqrt(jnp.sum(h * h, axis=1, keepdims=True))


if __name__ == "__main__":
    key = jax.random.PRNGKey(0)
    key, kx, kx2 = jax.random.split(key, 3)
    params = init_params(key)

    B = 8
    x = jax.random.normal(kx, (B, IN_DIM), jnp.float32)
    ref = reference_forward(x, params)

    # f32 path: exact semantics check against the pure-JAX reference.
    fwd_f32 = jax.jit(functools.partial(embedding_net_l2,
                                        compute_dtype=jnp.float32))
    out_f32 = jax.block_until_ready(fwd_f32(x, params))
    assert out_f32.shape == (B, OUT_DIM)
    assert jnp.allclose(out_f32, ref, atol=1e-5, rtol=1e-5), "f32 mismatch"

    # bf16-matmul path (default, MXU fast path on v6e/v7x): relaxed tolerance.
    fwd_bf16 = jax.jit(embedding_net_l2)
    out_bf16 = jax.block_until_ready(fwd_bf16(x, params))
    assert out_bf16.shape == (B, OUT_DIM)
    assert jnp.allclose(out_bf16, ref, atol=3e-2, rtol=0.0), "bf16 mismatch"
    assert bool(jnp.all(jnp.isfinite(out_bf16))), "non-finite output"

    # Multi-tile grid with a ragged last block (B=100 -> tm=56, grid=(2,)).
    B2 = 100
    x2 = jax.random.normal(kx2, (B2, IN_DIM), jnp.float32)
    ref2 = reference_forward(x2, params)
    out2 = jax.block_until_ready(fwd_bf16(x2, params))
    assert out2.shape == (B2, OUT_DIM)
    assert jnp.allclose(out2, ref2, atol=3e-2, rtol=0.0), "ragged-tile mismatch"
    assert bool(jnp.all(jnp.isfinite(out2))), "non-finite output (ragged)"

    print("KERNEL_OK")
</pallas_src>

<mosaic_0001>
module attributes {stable_mosaic.version = 11 : i64} {
  func.func @_embedding_l2_kernel(%arg0: i32, %arg1: memref<8x228xf32, #tpu.memory_space<vmem>>, %arg2: memref<228x256xf32, #tpu.memory_space<vmem>>, %arg3: memref<1x256xf32, #tpu.memory_space<vmem>>, %arg4: memref<256x128xf32, #tpu.memory_space<vmem>>, %arg5: memref<1x128xf32, #tpu.memory_space<vmem>>, %arg6: memref<128x30xf32, #tpu.memory_space<vmem>>, %arg7: memref<1x30xf32, #tpu.memory_space<vmem>>, %arg8: memref<8x30xf32, #tpu.memory_space<vmem>>) attributes {dimension_semantics = [#tpu.dimension_semantics<parallel>], iteration_bounds = array<i64: 1>, scalar_prefetch = 0 : i64, scratch_operands = 0 : i64, tpu.core_type = #tpu.core_type<tc>, window_params = [{transform_indices = @transform_0, window_bounds = array<i64: 8, 228>}, {pipeline_mode = #tpu.pipeline_mode<synchronous>, transform_indices = @transform_1, window_bounds = array<i64: 228, 256>}, {pipeline_mode = #tpu.pipeline_mode<synchronous>, transform_indices = @transform_2, window_bounds = array<i64: 1, 256>}, {pipeline_mode = #tpu.pipeline_mode<synchronous>, transform_indices = @transform_3, window_bounds = array<i64: 256, 128>}, {pipeline_mode = #tpu.pipeline_mode<synchronous>, transform_indices = @transform_4, window_bounds = array<i64: 1, 128>}, {pipeline_mode = #tpu.pipeline_mode<synchronous>, transform_indices = @transform_5, window_bounds = array<i64: 128, 30>}, {pipeline_mode = #tpu.pipeline_mode<synchronous>, transform_indices = @transform_6, window_bounds = array<i64: 1, 30>}, {transform_indices = @transform_7, window_bounds = array<i64: 8, 30>}]} {
    %c0 = arith.constant 0 : index
    %c0_0 = arith.constant 0 : index
    %0 = vector.load %arg1[%c0, %c0_0] : memref<8x228xf32, #tpu.memory_space<vmem>>, vector<8x228xf32>
    %c0_1 = arith.constant 0 : index
    %c0_2 = arith.constant 0 : index
    %1 = vector.load %arg2[%c0_1, %c0_2] : memref<228x256xf32, #tpu.memory_space<vmem>>, vector<228x256xf32>
    %cst = arith.constant dense<0.000000e+00> : vector<8x256xf32>
    %2 = tpu.matmul %0, %1, %cst {dimension_numbers = #tpu.dot_dimension_numbers<[1], [0], [0], [1], [0, 0, 1, 1], [], []>} : vector<8x228xf32>, vector<228x256xf32>, vector<8x256xf32> -> vector<8x256xf32>
    %c0_3 = arith.constant 0 : index
    %c0_4 = arith.constant 0 : index
    %3 = vector.load %arg3[%c0_3, %c0_4] : memref<1x256xf32, #tpu.memory_space<vmem>>, vector<1x256xf32>
    %4 = vector.broadcast %3 : vector<1x256xf32> to vector<8x256xf32>
    %5 = arith.addf %2, %4 : vector<8x256xf32>
    %cst_5 = arith.constant 0.000000e+00 : f32
    %6 = vector.broadcast %cst_5 : f32 to vector<8x256xf32>
    %7 = arith.maximumf %5, %6 : vector<8x256xf32>
    %c0_6 = arith.constant 0 : index
    %c0_7 = arith.constant 0 : index
    %8 = vector.load %arg4[%c0_6, %c0_7] : memref<256x128xf32, #tpu.memory_space<vmem>>, vector<256x128xf32>
    %cst_8 = arith.constant dense<0.000000e+00> : vector<8x128xf32>
    %9 = tpu.matmul %7, %8, %cst_8 {dimension_numbers = #tpu.dot_dimension_numbers<[1], [0], [0], [1], [0, 0, 1, 1], [], []>} : vector<8x256xf32>, vector<256x128xf32>, vector<8x128xf32> -> vector<8x128xf32>
    %c0_9 = arith.constant 0 : index
    %c0_10 = arith.constant 0 : index
    %10 = vector.load %arg5[%c0_9, %c0_10] : memref<1x128xf32, #tpu.memory_space<vmem>>, vector<1x128xf32>
    %11 = vector.broadcast %10 : vector<1x128xf32> to vector<8x128xf32>
    %12 = arith.addf %9, %11 : vector<8x128xf32>
    %cst_11 = arith.constant 0.000000e+00 : f32
    %13 = vector.broadcast %cst_11 : f32 to vector<8x128xf32>
    %14 = arith.maximumf %12, %13 : vector<8x128xf32>
    %c0_12 = arith.constant 0 : index
    %c0_13 = arith.constant 0 : index
    %15 = vector.load %arg6[%c0_12, %c0_13] : memref<128x30xf32, #tpu.memory_space<vmem>>, vector<128x30xf32>
    %cst_14 = arith.constant dense<0.000000e+00> : vector<8x30xf32>
    %16 = tpu.matmul %14, %15, %cst_14 {dimension_numbers = #tpu.dot_dimension_numbers<[1], [0], [0], [1], [0, 0, 1, 1], [], []>} : vector<8x128xf32>, vector<128x30xf32>, vector<8x30xf32> -> vector<8x30xf32>
    %c0_15 = arith.constant 0 : index
    %c0_16 = arith.constant 0 : index
    %17 = vector.load %arg7[%c0_15, %c0_16] : memref<1x30xf32, #tpu.memory_space<vmem>>, vector<1x30xf32>
    %18 = vector.broadcast %17 : vector<1x30xf32> to vector<8x30xf32>
    %19 = arith.addf %16, %18 : vector<8x30xf32>
    %20 = arith.mulf %19, %19 : vector<8x30xf32>
    %cst_17 = arith.constant dense<0.000000e+00> : vector<8xf32>
    %21 = vector.multi_reduction <add>, %20, %cst_17 [1] : vector<8x30xf32> to vector<8xf32>
    %22 = vector.shape_cast %21 : vector<8xf32> to vector<8x1xf32>
    %23 = math.rsqrt %22 : vector<8x1xf32>
    %24 = vector.broadcast %23 : vector<8x1xf32> to vector<8x30xf32>
    %25 = arith.mulf %19, %24 : vector<8x30xf32>
    %c0_18 = arith.constant 0 : index
    %c0_19 = arith.constant 0 : index
    %26 = vector.load %arg8[%c0_18, %c0_19] : memref<8x30xf32, #tpu.memory_space<vmem>>, vector<8x30xf32>
    tpu.vector_store %arg8[%c0_18, %c0_19], %25 {strides = array<i32>} : memref<8x30xf32, #tpu.memory_space<vmem>>, vector<8x30xf32>,
    return
  }
  func.func @transform_0(%arg0: i32) -> (i32, i32) {
    %c0_i32 = arith.constant 0 : i32
    %c0_i32_0 = arith.constant 0 : i32
    return %arg0, %c0_i32 : i32, i32
  }
  func.func @transform_1(%arg0: i32) -> (i32, i32) {
    %c0_i32 = arith.constant 0 : i32
    %c0_i32_0 = arith.constant 0 : i32
    %c0_i32_1 = arith.constant 0 : i32
    return %c0_i32, %c0_i32_0 : i32, i32
  }
  func.func @transform_2(%arg0: i32) -> (i32, i32) {
    %c0_i32 = arith.constant 0 : i32
    %c0_i32_0 = arith.constant 0 : i32
    %c0_i32_1 = arith.constant 0 : i32
    return %c0_i32, %c0_i32_0 : i32, i32
  }
  func.func @transform_3(%arg0: i32) -> (i32, i32) {
    %c0_i32 = arith.constant 0 : i32
    %c0_i32_0 = arith.constant 0 : i32
    %c0_i32_1 = arith.constant 0 : i32
    return %c0_i32, %c0_i32_0 : i32, i32
  }
  func.func @transform_4(%arg0: i32) -> (i32, i32) {
    %c0_i32 = arith.constant 0 : i32
    %c0_i32_0 = arith.constant 0 : i32
    %c0_i32_1 = arith.constant 0 : i32
    return %c0_i32, %c0_i32_0 : i32, i32
  }
  func.func @transform_5(%arg0: i32) -> (i32, i32) {
    %c0_i32 = arith.constant 0 : i32
    %c0_i32_0 = arith.constant 0 : i32
    %c0_i32_1 = arith.constant 0 : i32
    return %c0_i32, %c0_i32_0 : i32, i32
  }
  func.func @transform_6(%arg0: i32) -> (i32, i32) {
    %c0_i32 = arith.constant 0 : i32
    %c0_i32_0 = arith.constant 0 : i32
    %c0_i32_1 = arith.constant 0 : i32
    return %c0_i32, %c0_i32_0 : i32, i32
  }
  func.func @transform_7(%arg0: i32) -> (i32, i32) {
    %c0_i32 = arith.constant 0 : i32
    %c0_i32_0 = arith.constant 0 : i32
    return %arg0, %c0_i32 : i32, i32
  }
}

</mosaic_0001>

<bundles_post_ra>
// kernel: embedding_net_l2.1
= control target key start
LH: loop header
LB: loop body
LE: loop exit
PB: predicated region body
PF: predicated region fallthrough
CT: control target
= control target key end

     0   :  { %12 = vsyncpa [#allocation3], 0  ;;  %s588_s0 = inlined_call_operand.vmem [shape: f32[8,228], index: 0, kind: input, shape index: {}]   ;;  %s589_s1 = inlined_call_operand.hbm [shape: f32[228,256], index: 1, kind: input, shape index: {}]   ;;  %s590_s2 = inlined_call_operand.vmem [shape: f32[1,256], index: 2, kind: input, shape index: {}]   ;;  %s591_s3 = inlined_call_operand.hbm [shape: f32[256,128], index: 3, kind: input, shape index: {}]   ;;  %s592_s4 = inlined_call_operand.vmem [shape: f32[1,128], index: 4, kind: input, shape index: {}]   ;;  %s593_s5 = inlined_call_operand.vmem [shape: f32[128,30], index: 5, kind: input, shape index: {}]   ;;  %s594_s6 = inlined_call_operand.vmem [shape: f32[1,30], index: 6, kind: input, shape index: {}]   ;;  %s595_s7 = inlined_call_operand.hbm [shape: f32[8,30], index: 7, kind: output, shape index: {}]  }
   0x1   :  { %13 = vsyncpa [#allocation6], 0 }
   0x2   :  { %14 = vsyncpa [#allocation4], 0  ;;  %s21_s26 = sshll.u32 %s589_s1, 4  ;;  %s463_s27 = smov [#allocation2]   ;;  %s22_s26 = int_to_ptr.hbm [resolvable:$true] %s21_s26 }
   0x3   :  { %s23_s28 = sshll.u32 %s463_s27, 4  ;;  %s36_s8 = sshll.u32 %s591_s3, 4  ;;  %s24_s28 = int_to_ptr.vmem [resolvable:$true] %s23_s28  ;;  %s37_s8 = int_to_ptr.hbm [resolvable:$true] %s36_s8 }
   0x4   :  { %s464_s9 = smov 256   ;;  %s465_s10 = smov 16  }
   0x5   :  { %29 = dma.hbm_to_vmem [thread:$0]  %s22_s26, 7424, %s24_s28, [#allocation3], %s464_s9, %s464_s9, %s465_s10  }
   0x6   :  { %s466_s11 = smov [#allocation5]   ;;  %s467_s13 = smov 128  }
   0x7   :  { %s38_s12 = sshll.u32 %s466_s11, 4  ;;  %s468_s14 = smov 8   ;;  %s39_s12 = int_to_ptr.vmem [resolvable:$true] %s38_s12 }
   0x8   :  { %44 = dma.hbm_to_vmem [thread:$0]  %s37_s8, 4096, %s39_s12, [#allocation6], %s467_s13, %s467_s13, %s468_s14  }
   0x9   :  { %457 = dma.done.wait [#allocation3], 7424  }
   0xa   :  { %458 = vsyncadd [#allocation3], 4294959872 }
   0xb   :  { %459 = dma.done.wait [#allocation6], 4096  }
   0xc   :  { %460 = vsyncadd [#allocation6], 4294963200  ;;  %vm129_vm0 = vcmask 1043456   ;;  %v92_v0 = vld [vmem:[#allocation2 + $0xf8] sm:$0xff]  ;;  %v90_v1 = vld [vmem:[#allocation2 + $0xe8] sm:$0xff]  ;;  %vm125_vm1 = vcmask 818176  }
   0xd   :  { %176 = vmatpush.msra.mxu2 %v92_v0  ;;  %v118_v2 = vld [vmem:[#allocation2 + $0x1c8] sm:$0xf]  ;;  %v88_v3 = vld [vmem:[#allocation2 + $0xd8] sm:$0xff]  ;;  %v91_v4 = vld [vmem:[#allocation2 + $0xf0] sm:$0xff]  ;;  %vm336_vm2 = vcmask 244736   ;;  %s359_s28 = sshll.u32 %s595_s7, 4  ;;  %s360_s28 = int_to_ptr.hbm [resolvable:$true] %s359_s28 }
   0xe   :  { %372 = vmatpush.msk.msra.mxu3 %vm129_vm0, %v118_v2  ;;  %v116_v5 = vld [vmem:[#allocation2 + $0x1b8] sm:$0xff]  ;;  %136 = vmatpush.msra.mxu0 %v91_v4  ;;  %v89_v6 = vld [vmem:[#allocation2 + $0xe0] sm:$0xff]  ;;  %v114_v7 = vld [vmem:[#allocation2 + $0x1a8] sm:$0xff] }
   0xf   :  { %177 = vmatpush.msra.mxu2 %v90_v1  ;;  %v86_v8 = vld [vmem:[#allocation2 + $0xc8] sm:$0xff]  ;;  %v87_v9 = vld [vmem:[#allocation2 + $0xd0] sm:$0xff]  ;;  %v112_v10 = vld [vmem:[#allocation2 + $0x198] sm:$0xff] }
  0x10   :  { %200 = vmatpush.msra.mxu3 %v116_v5  ;;  %137 = vmatpush.msra.mxu0 %v89_v6  ;;  %v84_v11 = vld [vmem:[#allocation2 + $0xb8] sm:$0xff]  ;;  %v85_v12 = vld [vmem:[#allocation2 + $0xc0] sm:$0xff]  ;;  %v110_v14 = vld [vmem:[#allocation2 + $0x188] sm:$0xff] }
  0x11   :  { %178 = vmatpush.msra.mxu2 %v88_v3  ;;  %v117_v13 = vld [vmem:[#allocation2 + $0x1c0] sm:$0xf]  ;;  %v115_v15 = vld [vmem:[#allocation2 + $0x1b0] sm:$0xff]  ;;  %v82_v16 = vld [vmem:[#allocation2 + $0xa8] sm:$0xff] }
  0x12   :  { %201 = vmatpush.msra.mxu3 %v114_v7  ;;  %138 = vmatpush.msra.mxu0 %v87_v9  ;;  %v83_v17 = vld [vmem:[#allocation2 + $0xb0] sm:$0xff]  ;;  %v108_v18 = vld [vmem:[#allocation2 + $0x178] sm:$0xff]  ;;  %v113_v19 = vld [vmem:[#allocation2 + $0x1a0] sm:$0xff] }
  0x13   :  { %179 = vmatpush.msra.mxu2 %v86_v8  ;;  %370 = vmatpush.msk.msra.mxu1 %vm129_vm0, %v117_v13  ;;  %v80_v20 = vld [vmem:[#allocation2 + $0x98] sm:$0xff]  ;;  %v81_v21 = vld [vmem:[#allocation2 + $0xa0] sm:$0xff]  ;;  %v106_v22 = vld [vmem:[#allocation2 + $0x168] sm:$0xff] }
  0x14   :  { %202 = vmatpush.msra.mxu3 %v112_v10  ;;  %139 = vmatpush.msra.mxu0 %v85_v12  ;;  %v111_v23 = vld [vmem:[#allocation2 + $0x190] sm:$0xff]  ;;  %v78_v24 = vld [vmem:[#allocation2 + $0x88] sm:$0xff]  ;;  %v104_v26 = vld [vmem:[#allocation2 + $0x158] sm:$0xff] }
  0x15   :  { %180 = vmatpush.msra.mxu2 %v84_v11  ;;  %160 = vmatpush.msra.mxu1 %v115_v15  ;;  %v79_v25 = vld [vmem:[#allocation2 + $0x90] sm:$0xff]  ;;  %v109_v27 = vld [vmem:[#allocation2 + $0x180] sm:$0xff]  ;;  %v76_v28 = vld [vmem:[#allocation2 + $0x78] sm:$0xff] }
  0x16   :  { %203 = vmatpush.msra.mxu3 %v110_v14  ;;  %140 = vmatpush.msra.mxu0 %v83_v17  ;;  %v77_v29 = vld [vmem:[#allocation2 + $0x80] sm:$0xff]  ;;  %v102_v30 = vld [vmem:[#allocation2 + $0x148] sm:$0xff]  ;;  %v107_v31 = vld [vmem:[#allocation2 + $0x170] sm:$0xff] }
  0x17   :  { %181 = vmatpush.msra.mxu2 %v82_v16  ;;  %161 = vmatpush.msra.mxu1 %v113_v19  ;;  %v74_v32 = vld [vmem:[#allocation2 + $0x68] sm:$0xff]  ;;  %v75_v33 = vld [vmem:[#allocation2 + $0x70] sm:$0xff]  ;;  %v100_v34 = vld [vmem:[#allocation2 + $0x138] sm:$0xff] }
  0x18   :  { %204 = vmatpush.msra.mxu3 %v108_v18  ;;  %141 = vmatpush.msra.mxu0 %v81_v21  ;;  %v105_v35 = vld [vmem:[#allocation2 + $0x160] sm:$0xff]  ;;  %v72_v36 = vld [vmem:[#allocation2 + $0x58] sm:$0xff]  ;;  %v98_v38 = vld [vmem:[#allocation2 + $0x128] sm:$0xff] }
  0x19   :  { %182 = vmatpush.msra.mxu2 %v80_v20  ;;  %162 = vmatpush.msra.mxu1 %v111_v23  ;;  %v73_v37 = vld [vmem:[#allocation2 + $0x60] sm:$0xff]  ;;  %v103_v39 = vld [vmem:[#allocation2 + $0x150] sm:$0xff]  ;;  %v70_v40 = vld [vmem:[#allocation2 + $0x48] sm:$0xff] }
  0x1a   :  { %205 = vmatpush.msra.mxu3 %v106_v22  ;;  %142 = vmatpush.msra.mxu0 %v79_v25  ;;  %v71_v41 = vld [vmem:[#allocation2 + $0x50] sm:$0xff]  ;;  %v96_v42 = vld [vmem:[#allocation2 + $0x118] sm:$0xff]  ;;  %v101_v43 = vld [vmem:[#allocation2 + $0x140] sm:$0xff] }
  0x1b   :  { %183 = vmatpush.msra.mxu2 %v78_v24  ;;  %163 = vmatpush.msra.mxu1 %v109_v27  ;;  %v68_v44 = vld [vmem:[#allocation2 + $0x38] sm:$0xff]  ;;  %v69_v45 = vld [vmem:[#allocation2 + $0x40] sm:$0xff]  ;;  %v94_v46 = vld [vmem:[#allocation2 + $0x108] sm:$0xff] }
  0x1c   :  { %206 = vmatpush.msra.mxu3 %v104_v26  ;;  %143 = vmatpush.msra.mxu0 %v77_v29  ;;  %v99_v47 = vld [vmem:[#allocation2 + $0x130] sm:$0xff]  ;;  %v66_v48 = vld [vmem:[#allocation2 + $0x28] sm:$0xff]  ;;  %v97_v51 = vld [vmem:[#allocation2 + $0x120] sm:$0xff] }
  0x1d   :  { %184 = vmatpush.msra.mxu2 %v76_v28  ;;  %164 = vmatpush.msra.mxu1 %v107_v31  ;;  %v60_v49 = vld [vmem:[%s588_s0 + $0x8] sm:$0xff]  ;;  %v67_v50 = vld [vmem:[#allocation2 + $0x30] sm:$0xff]  ;;  %v64_v52 = vld [vmem:[#allocation2 + $0x18] sm:$0xff] }
  0x1e   :  { %207 = vmatpush.msra.mxu3 %v102_v30  ;;  %144 = vmatpush.msra.mxu0 %v75_v33  ;;  %v249_v53 = vld [vmem:[#allocation5 + $0xf8] sm:$0xff]  ;;  %v65_v54 = vld [vmem:[#allocation2 + $0x20] sm:$0xff]  ;;  %v95_v55 = vld [vmem:[#allocation2 + $0x110] sm:$0xff] }
  0x1f   :  { %185 = vmatpush.msra.mxu2 %v74_v32  ;;  %165 = vmatpush.msra.mxu1 %v105_v35  ;;  %v62_v56 = vld [vmem:[#allocation2 + $0x8] sm:$0xff]  ;;  %v248_v57 = vld [vmem:[#allocation5 + $0xf0] sm:$0xff]  ;;  %v63_v59 = vld [vmem:[#allocation2 + $0x10] sm:$0xff] }
  0x20   :  { %208 = vmatpush.msra.mxu3 %v100_v34  ;;  %145 = vmatpush.msra.mxu0 %v73_v37  ;;  %v59_v58 = vld [vmem:[%s588_s0] sm:$0xff]  ;;  %v247_v61 = vld [vmem:[#allocation5 + $0xe8] sm:$0xff]  ;;  %v233_v63 = vld [vmem:[#allocation5 + $0x78] sm:$0xff] }
  0x21   :  { %186 = vmatpush.msra.mxu2 %v72_v36  ;;  %166 = vmatpush.msra.mxu1 %v103_v39  ;;  %v93_v60 = vld [vmem:[#allocation2 + $0x100] sm:$0xff]  ;;  %v246_v0 = vld [vmem:[#allocation5 + $0xe0] sm:$0xff]  ;;  %v245_v2 = vld [vmem:[#allocation5 + $0xd8] sm:$0xff] }
  0x22   :  { %209 = vmatpush.msra.mxu3 %v98_v38  ;;  %146 = vmatpush.msra.mxu0 %v71_v41  ;;  %v61_v62 = vld [vmem:[#allocation2] sm:$0xff]  ;;  %v231_v3 = vld [vmem:[#allocation5 + $0x68] sm:$0xff]  ;;  %v230_v5 = vld [vmem:[#allocation5 + $0x60] sm:$0xff] }
  0x23   :  { %187 = vmatpush.msra.mxu2 %v70_v40  ;;  %167 = vmatpush.msra.mxu1 %v101_v43  ;;  %v232_v1 = vld [vmem:[#allocation5 + $0x70] sm:$0xff]  ;;  %v243_v6 = vld [vmem:[#allocation5 + $0xc8] sm:$0xff]  ;;  %v229_v7 = vld [vmem:[#allocation5 + $0x58] sm:$0xff] }
  0x24   :  { %210 = vmatpush.msra.mxu3 %v96_v42  ;;  %147 = vmatpush.msra.mxu0 %v69_v45  ;;  %v244_v4 = vld [vmem:[#allocation5 + $0xd0] sm:$0xff]  ;;  %v242_v8 = vld [vmem:[#allocation5 + $0xc0] sm:$0xff]  ;;  %v241_v10 = vld [vmem:[#allocation5 + $0xb8] sm:$0xff] }
  0x25   :  { %188 = vmatpush.msra.mxu2 %v68_v44  ;;  %168 = vmatpush.msra.mxu1 %v99_v47  ;;  %v228_v9 = vld [vmem:[#allocation5 + $0x50] sm:$0xff]  ;;  %v227_v11 = vld [vmem:[#allocation5 + $0x48] sm:$0xff]  ;;  %v226_v13 = vld [vmem:[#allocation5 + $0x40] sm:$0xff] }
  0x26   :  { %211 = vmatpush.msra.mxu3 %v94_v46  ;;  %148 = vmatpush.msra.mxu0 %v67_v50  ;;  %v240_v12 = vld [vmem:[#allocation5 + $0xb0] sm:$0xff]  ;;  %v239_v14 = vld [vmem:[#allocation5 + $0xa8] sm:$0xff]  ;;  %v225_v15 = vld [vmem:[#allocation5 + $0x38] sm:$0xff] }
  0x27   :  { %189 = vmatpush.msra.mxu2 %v66_v48  ;;  %373 = vmatmul.msk.f32.vlgmr.msra.gmra.mxu3 %vm125_vm1, %v60_v49  ;;  %v238_v16 = vld [vmem:[#allocation5 + $0xa0] sm:$0xff]  ;;  %v224_v17 = vld [vmem:[#allocation5 + $0x30] sm:$0xff]  ;;  %v223_v18 = vld [vmem:[#allocation5 + $0x28] sm:$0xff] }
  0x28   :  { %169 = vmatpush.msra.mxu1 %v97_v51  ;;  %274 = vmatpush.msrb.mxu3 %v249_v53  ;;  %v237_v19 = vld [vmem:[#allocation5 + $0x98] sm:$0xff]  ;;  %v222_v20 = vld [vmem:[#allocation5 + $0x20] sm:$0xff]  ;;  %v236_v21 = vld [vmem:[#allocation5 + $0x90] sm:$0xff] }
  0x29   :  { %190 = vmatpush.msra.mxu2 %v64_v52  ;;  %149 = vmatpush.msra.mxu0 %v65_v54  ;;  %v221_v22 = vld [vmem:[#allocation5 + $0x18] sm:$0xff]  ;;  %v235_v23 = vld [vmem:[#allocation5 + $0x88] sm:$0xff]  ;;  %v220_v24 = vld [vmem:[#allocation5 + $0x10] sm:$0xff] }
  0x2a   :  { %170 = vmatpush.msra.mxu1 %v95_v55  ;;  %275 = vmatpush.msrb.mxu3 %v248_v57  ;;  %v234_v25 = vld [vmem:[#allocation5 + $0x80] sm:$0xff]  ;;  %v219_v26 = vld [vmem:[#allocation5 + $0x8] sm:$0xff]  ;;  %v308_v30 = vld [vmem:[%s593_s5 + $0x68] sm:$0xff] }
  0x2b   :  { %191 = vmatpush.msra.mxu2 %v62_v56  ;;  %150 = vmatpush.msra.mxu0 %v63_v59  ;;  %v218_v27 = vld [vmem:[#allocation5] sm:$0xff]  ;;  %v310_v28 = vld [vmem:[%s593_s5 + $0x78] sm:$0xff]  ;;  %v307_v31 = vld [vmem:[%s593_s5 + $0x60] sm:$0xff] }
  0x2c   :  { %192 = vmatmul.f32.vlgmr.msra.gmra.mxu2 %v59_v58  ;;  %171 = vmatpush.msra.mxu1 %v93_v60  ;;  %v309_v29 = vld [vmem:[%s593_s5 + $0x70] sm:$0xff]  ;;  %v306_v32 = vld [vmem:[%s593_s5 + $0x58] sm:$0xff]  ;;  %v304_v34 = vld [vmem:[%s593_s5 + $0x48] sm:$0xff] }
  0x2d   :  { %276 = vmatpush.msrb.mxu3 %v247_v61  ;;  %151 = vmatpush.msra.mxu0 %v61_v62  ;;  %v305_v33 = vld [vmem:[%s593_s5 + $0x50] sm:$0xff]  ;;  %v303_v35 = vld [vmem:[%s593_s5 + $0x40] sm:$0xff]  ;;  %v302_v36 = vld [vmem:[%s593_s5 + $0x38] sm:$0xff] }
  0x2e   :  { %371 = vmatmul.msk.f32.vlgmr.msra.gmra.mxu1 %vm125_vm1, %v60_v49  ;;  %152 = vmatmul.f32.vlgmr.msra.gmra.mxu0 %v59_v58  ;;  %v301_v37 = vld [vmem:[%s593_s5 + $0x30] sm:$0xff]  ;;  %v119_v38 = vld [vmem:[%s590_s2] sm:$0x3]  ;;  %v300_v39 = vld [vmem:[%s593_s5 + $0x28] sm:$0xff] }
  0x2f   :  { %254 = vmatpush.msrb.mxu1 %v233_v63  ;;  %277 = vmatpush.msrb.mxu3 %v246_v0  ;;  %v121_v40 = vperm.slane %v119_v38, 0  ;;  %v299_v41 = vld [vmem:[%s593_s5 + $0x20] sm:$0xff]  ;;  %v122_v42 = vperm.slane %v119_v38, 1  ;;  %v298_v53 = vld [vmem:[%s593_s5 + $0x18] sm:$0xff]  ;;  %v297_v54 = vld [vmem:[%s593_s5 + $0x10] sm:$0xff] }
  0x30   :  { %315 = vmatpush.msrb.mxu0 %v310_v28  ;;  %v296_v55 = vld [vmem:[%s593_s5 + $0x8] sm:$0xff]  ;;  %v295_v56 = vld [vmem:[%s593_s5] sm:$0xff] }
  0x31   :  { %255 = vmatpush.msrb.mxu1 %v232_v1  ;;  %278 = vmatpush.msrb.mxu3 %v245_v2  ;;  %v381_v57 = vld [vmem:[%s592_s4] ss:$0 sm:$0xff]  ;;  %s469_s4 = smov [#allocation7]  }
  0x32   :  { %316 = vmatpush.msrb.mxu0 %v309_v29  ;;  %v382_v63 = vld [vmem:[%s594_s6] ss:$0 sm:$0xff]  ;;  %s357_s5 = sshll.u32 %s469_s4, 4  ;;  %s358_s5 = int_to_ptr.vmem [resolvable:$true] %s357_s5 }
  0x33   :  { %256 = vmatpush.msrb.mxu1 %v231_v3  ;;  %279 = vmatpush.msrb.mxu3 %v244_v4 }
  0x34   :  { %317 = vmatpush.msrb.mxu0 %v308_v30 }
  0x35   :  { %257 = vmatpush.msrb.mxu1 %v230_v5  ;;  %280 = vmatpush.msrb.mxu3 %v243_v6 }
  0x36   :  { %318 = vmatpush.msrb.mxu0 %v307_v31 }
  0x37   :  { %258 = vmatpush.msrb.mxu1 %v229_v7  ;;  %281 = vmatpush.msrb.mxu3 %v242_v8 }
  0x38   :  { %319 = vmatpush.msrb.mxu0 %v306_v32 }
  0x39   :  { %259 = vmatpush.msrb.mxu1 %v228_v9  ;;  %282 = vmatpush.msrb.mxu3 %v241_v10 }
  0x3a   :  { %320 = vmatpush.msrb.mxu0 %v305_v33 }
  0x3b   :  { %260 = vmatpush.msrb.mxu1 %v227_v11  ;;  %283 = vmatpush.msrb.mxu3 %v240_v12 }
  0x3c   :  { %321 = vmatpush.msrb.mxu0 %v304_v34 }
  0x3d   :  { %261 = vmatpush.msrb.mxu1 %v226_v13  ;;  %284 = vmatpush.msrb.mxu3 %v239_v14 }
  0x3e   :  { %322 = vmatpush.msrb.mxu0 %v303_v35 }
  0x3f   :  { %262 = vmatpush.msrb.mxu1 %v225_v15  ;;  %285 = vmatpush.msrb.mxu3 %v238_v16 }
  0x40   :  { %323 = vmatpush.msrb.mxu0 %v302_v36 }
  0x41   :  { %263 = vmatpush.msrb.mxu1 %v224_v17  ;;  %286 = vmatpush.msrb.mxu3 %v237_v19 }
  0x42   :  { %324 = vmatpush.msrb.mxu0 %v301_v37 }
  0x43   :  { %264 = vmatpush.msrb.mxu1 %v223_v18  ;;  %287 = vmatpush.msrb.mxu3 %v236_v21 }
  0x44   :  { %325 = vmatpush.msrb.mxu0 %v300_v39 }
  0x45   :  { %265 = vmatpush.msrb.mxu1 %v222_v20  ;;  %288 = vmatpush.msrb.mxu3 %v235_v23 }
  0x46   :  { %326 = vmatpush.msrb.mxu0 %v299_v41 }
  0x47   :  { %266 = vmatpush.msrb.mxu1 %v221_v22  ;;  %289 = vmatpush.msrb.mxu3 %v234_v25 }
  0x48   :  { %327 = vmatpush.msrb.mxu0 %v298_v53 }
  0x49   :  { %267 = vmatpush.msrb.mxu1 %v220_v24 }
  0x4a   :  { %328 = vmatpush.msrb.mxu0 %v297_v54 }
  0x4b   :  { %268 = vmatpush.msrb.mxu1 %v219_v26 }
  0x4c   :  { %329 = vmatpush.msrb.mxu0 %v296_v55 }
  0x4d   :  { %269 = vmatpush.msrb.mxu1 %v218_v27 }
  0x4e   :  { %330 = vmatpush.msrb.mxu0 %v295_v56 }
  0xaa   :  { %v213_v47 = vpop.f32.mrf.mxu3 }
  0xab   :  { %v153_v43 = vpop.f32.mrf.mxu0  ;;  %v173_v44 = vpop.f32.mrf.mxu1 }
  0xac   :  { %v154_v45 = vadd.f32 %v153_v43, %v121_v40 }
  0xae   :  { %v174_v48 = vadd.f32 %v173_v44, %v154_v45 }
  0xaf   :  { %v193_v46 = vpop.f32.mrf.mxu2 }
  0xb0   :  { %v194_v49 = vadd.f32 %v193_v46, %v122_v42  ;;  %v216_v50 = vmax.f32 %v174_v48, 0.0 }
  0xb2   :  { %v214_v51 = vadd.f32 %v213_v47, %v194_v49  ;;  %270 = vmatmul.f32.vlgmr.msrb.gmra.mxu1 %v216_v50 }
  0xb4   :  { %v217_v52 = vmax.f32 %v214_v51, 0.0 }
  0xb6   :  { %290 = vmatmul.f32.vlgmr.msrb.gmra.mxu3 %v217_v52 }
 0x12f   :  { %v271_v58 = vpop.f32.mrf.mxu1 }
 0x130   :  { %v272_v59 = vadd.f32 %v381_v57, %v271_v58 }
 0x139   :  { %v291_v60 = vpop.f32.mrf.mxu3 }
 0x13a   :  { %v292_v61 = vadd.f32 %v291_v60, %v272_v59 }
 0x13c   :  { %v294_v62 = vmax.f32 %v292_v61, 0.0 }
 0x13e   :  { %331 = vmatmul.f32.vlgmr.msrb.gmra.mxu0 %v294_v62 }
 0x1bb   :  { %v332_v0 = vpop.f32.mrf.mxu0 }
 0x1bc   :  { %v333_v1 = vadd.f32 %v382_v63, %v332_v0 }
 0x1be   :  { %v335_v2 = vmul.f32 %v333_v1, %v333_v1 }
 0x1c0   :  { %v337_v3 = vsel %vm336_vm2, %v335_v2, 0.0 }
 0x1c1   :  { %338 = vadd.xlane.f32.xlu0 %v337_v3 }
 0x234   :  { %v339_v4 = vpop.xlane.xlu0 %338 }
 0x235   :  { %383 = vrsqrt.f32 %v339_v4  ;;  %vm346_vm4 = vweird.f32 %v339_v4 }
 0x23b   :  { %v384_v5 = vpop.eup %383 }
 0x23c   :  { %v341_v6 = vmul.f32 %v384_v5, %v339_v4  ;;  %vm347_vm3 = vweird.f32 %v384_v5 }
 0x23d   :  { %vm348_vm5 = vmor %vm346_vm4, %vm347_vm3 }
 0x23e   :  { %v342_v7 = vmul.f32 %v384_v5, %v341_v6 }
 0x240   :  { %v343_v8 = vmul.f32 0.5, %v342_v7 }
 0x242   :  { %v344_v9 = vsub.f32 1.5, %v343_v8 }
 0x244   :  { %v345_v10 = vmul.f32 %v384_v5, %v344_v9 }
 0x246   :  { %v349_v11 = vsel %vm348_vm5, %v384_v5, %v345_v10 }
 0x247   :  { %v350_v12 = vmul.f32 %v349_v11, %v333_v1 }
 0x249   :  { %351 = vst.msk [vmem:[#allocation7] sm:$0xff] %vm336_vm2, %v350_v12 }
 0x24a   :  { %362 = dma.vmem_to_hbm [thread:$0]  %s358_s5, 128, %s360_s28, [#allocation4]  }
 0x24b   :  { %461 = dma.done.wait [#allocation4], 128  }
 0x24c   :  { %462 = vsyncadd [#allocation4], 4294967168 }
 0x24d   :  { %367 = vsyncpa [#allocation3], 1 }
 0x24e   :  { %368 = vsyncpa [#allocation6], 1 }
 0x24f   :  { %369 = vsyncpa [#allocation4], 1 }

</bundles_post_ra>
